<compile_context>
chip_gen: v6e
topology: v6e:2x2x1
jax: 0.10.0
libtpu: 0.0.40
codegen_flags: <defaults>
</compile_context>

<pallas_src>
import jax
import jax.numpy as jnp
from jax import lax
from jax.experimental import pallas as pl
from jax.experimental.pallas import tpu as pltpu


def _round_up(x, m):
    return (x + m - 1) // m * m


# --------------------------------------------------------------------------- kernels

def _lin1_kernel(x_ref, w1_ref, xw_ref):
    # XW = X @ W1 in f32, emitted as bf16 for the bandwidth-bound aggregation pass.
    xw = jnp.dot(x_ref[...], w1_ref[...], preferred_element_type=jnp.float32)
    xw_ref[...] = xw.astype(xw_ref.dtype)


def _conv1_kernel(a1_ref, xw_ref, b1_ref, feat_f32_ref, feat_bf16_ref, acc_ref):
    # feat = relu(A1_norm @ XW + b1); grid = (row blocks i, source blocks k), k is the reduction.
    k = pl.program_id(1)

    @pl.when(k == 0)
    def _():
        acc_ref[...] = jnp.zeros_like(acc_ref)

    acc_ref[...] += jnp.dot(a1_ref[...], xw_ref[...],
                            preferred_element_type=jnp.float32)

    @pl.when(k == pl.num_programs(1) - 1)
    def _():
        h = jnp.maximum(acc_ref[...] + b1_ref[...], 0.0)
        feat_f32_ref[...] = h                              # `features` returned by forward
        feat_bf16_ref[...] = h.astype(feat_bf16_ref.dtype)  # bf16 copy consumed by conv2 aggregation


def _conv2_kernel(a2_ref, hsrc_ref, hdst_ref, wrow_ref, bout_ref, out_ref, acc_ref):
    # out_row = (A2_norm @ H) @ w_out + H @ w_root + b_out, stored lane-dense as (1, block).
    k = pl.program_id(1)

    @pl.when(k == 0)
    def _():
        acc_ref[...] = jnp.zeros_like(acc_ref)

    acc_ref[...] += jnp.dot(a2_ref[...], hsrc_ref[...],
                            preferred_element_type=jnp.float32)

    @pl.when(k == pl.num_programs(1) - 1)
    def _():
        # Fuse the two (nhid x 1) matvecs into one matmul: [agg | h_dst] (tm, 2H) contracted
        # against [w_out ; w_root] (1, 2H) on the last axis -> (1, tm), i.e. the per-node
        # scalar lands directly in a lane-dense row (no masked (tm,1) partial stores).
        hcat = jnp.concatenate([acc_ref[...], hdst_ref[...]], axis=1)
        z = lax.dot_general(wrow_ref[...], hcat,
                            (((1,), (1,)), ((), ())),
                            preferred_element_type=jnp.float32)
        out_ref[...] = z + bout_ref[...]


# --------------------------------------------------------------------------- adjacency construction

def _gcn_norm_dense(edge_index, edge_weight, n, dtype=jnp.float32):
    """Dense D^{-1/2}(A_w + remaining self loops) D^{-1/2}, PyG gcn_norm semantics."""
    row, col = edge_index[0], edge_index[1]            # row = source j, col = target i
    a = jnp.zeros((n, n), dtype).at[col, row].add(edge_weight.astype(dtype))
    has_loop = jnp.zeros((n,), dtype).at[col].add(
        jnp.where(row == col, 1.0, 0.0).astype(dtype))
    a = a + jnp.diag(jnp.where(has_loop > 0, 0.0, 1.0).astype(dtype))
    deg = a.sum(axis=1)
    dinv = jnp.where(deg > 0, lax.rsqrt(jnp.maximum(deg, 1e-30)), 0.0)
    return dinv[:, None] * a * dinv[None, :]


def _cluster_gcn_norm_dense(edge_index, n, dtype=jnp.float32):
    """Dense D^{-1}(A_bin + I), PyG ClusterGCNConv (diag_lambda=0) semantics."""
    row, col = edge_index[0], edge_index[1]
    off_diag = jnp.where(row == col, 0.0, 1.0).astype(dtype)   # remove_self_loops
    a = jnp.zeros((n, n), dtype).at[col, row].add(off_diag)
    a = a + jnp.eye(n, dtype=dtype)                            # add_self_loops
    deg = a.sum(axis=1)
    return (1.0 / jnp.maximum(deg, 1.0))[:, None] * a


# --------------------------------------------------------------------------- params / forward

def init_params(num_features, nhid, key):
    k1, k2, k3 = jax.random.split(key, 3)
    w1 = jax.random.normal(k1, (num_features, nhid), jnp.float32) / jnp.sqrt(
        jnp.float32(num_features))
    b1 = jnp.zeros((1, nhid), jnp.float32)
    w_out = jax.random.normal(k2, (nhid, 1), jnp.float32) / jnp.sqrt(jnp.float32(nhid))
    b_out = jnp.zeros((1, 1), jnp.float32)
    w_root = jax.random.normal(k3, (nhid, 1), jnp.float32) / jnp.sqrt(jnp.float32(nhid))
    return dict(w1=w1, b1=b1, w_out=w_out, b_out=b_out, w_root=w_root)


def gcn_forward(x, edge_index, edge_weight, params, *, block=256):
    n, f = x.shape
    nhid = params["w1"].shape[1]
    np_ = _round_up(n, block)
    ni = np_ // block
    nk = np_ // block

    # Dense normalized adjacencies; cast to bf16 (they dominate HBM bytes), pad to tile multiple.
    a1 = _gcn_norm_dense(edge_index, edge_weight, n)
    a2 = _cluster_gcn_norm_dense(edge_index, n)
    pad2 = ((0, np_ - n), (0, np_ - n))
    a1 = jnp.pad(a1, pad2).astype(jnp.bfloat16)
    a2 = jnp.pad(a2, pad2).astype(jnp.bfloat16)
    x_p = jnp.pad(x.astype(jnp.float32), ((0, np_ - n), (0, 0)))

    w1 = params["w1"].astype(jnp.float32)
    b1 = params["b1"].reshape(1, nhid).astype(jnp.float32)
    # fused projection row [w_out ; w_root] -> (1, 2*nhid)
    w_row = jnp.concatenate(
        [params["w_out"].reshape(-1), params["w_root"].reshape(-1)]).reshape(1, 2 * nhid)
    w_row = w_row.astype(jnp.float32)
    b_out = params["b_out"].reshape(1, 1).astype(jnp.float32)

    par_arb = pltpu.CompilerParams(dimension_semantics=("parallel", "arbitrary"))

    # ---------------- lin1: XW = X @ W1 (bf16 output) ----------------
    xw = pl.pallas_call(
        _lin1_kernel,
        out_shape=jax.ShapeDtypeStruct((np_, nhid), jnp.bfloat16),
        grid=(ni,),
        in_specs=[pl.BlockSpec((block, f), lambda i: (i, 0)),
                  pl.BlockSpec((f, nhid), lambda i: (0, 0))],
        out_specs=pl.BlockSpec((block, nhid), lambda i: (i, 0)),
        compiler_params=pltpu.CompilerParams(dimension_semantics=("parallel",)),
    )(x_p, w1)

    # ---------------- conv1 (GCNConv): feat = relu(A1 @ XW + b1) ----------------
    feat_f32, feat_bf16 = pl.pallas_call(
        _conv1_kernel,
        out_shape=(jax.ShapeDtypeStruct((np_, nhid), jnp.float32),
                   jax.ShapeDtypeStruct((np_, nhid), jnp.bfloat16)),
        grid=(ni, nk),
        in_specs=[pl.BlockSpec((block, block), lambda i, k: (i, k)),
                  pl.BlockSpec((block, nhid), lambda i, k: (k, 0)),
                  pl.BlockSpec((1, nhid), lambda i, k: (0, 0))],
        out_specs=(pl.BlockSpec((block, nhid), lambda i, k: (i, 0)),
                   pl.BlockSpec((block, nhid), lambda i, k: (i, 0))),
        scratch_shapes=[pltpu.VMEM((block, nhid), jnp.float32)],
        compiler_params=par_arb,
        cost_estimate=pl.CostEstimate(
            flops=2 * np_ * np_ * nhid,
            transcendentals=0,
            bytes_accessed=2 * np_ * np_ + np_ * nhid * (2 + 4 + 2)),
    )(a1, xw, b1)

    # ---------------- conv2 (ClusterGCNConv, diag_lambda=0) ----------------
    out_row = pl.pallas_call(
        _conv2_kernel,
        out_shape=jax.ShapeDtypeStruct((1, np_), jnp.float32),
        grid=(ni, nk),
        in_specs=[pl.BlockSpec((block, block), lambda i, k: (i, k)),
                  pl.BlockSpec((block, nhid), lambda i, k: (k, 0)),   # H (bf16) for aggregation
                  pl.BlockSpec((block, nhid), lambda i, k: (i, 0)),   # H (f32) for root term
                  pl.BlockSpec((1, 2 * nhid), lambda i, k: (0, 0)),
                  pl.BlockSpec((1, 1), lambda i, k: (0, 0))],
        out_specs=pl.BlockSpec((1, block), lambda i, k: (0, i)),
        scratch_shapes=[pltpu.VMEM((block, nhid), jnp.float32)],
        compiler_params=par_arb,
        cost_estimate=pl.CostEstimate(
            flops=2 * np_ * np_ * nhid + 4 * np_ * nhid,
            transcendentals=0,
            bytes_accessed=2 * np_ * np_ + np_ * nhid * (2 + 4) + 4 * np_),
    )(a2, feat_bf16, feat_f32, w_row, b_out)

    return out_row[0, :n], feat_f32[:n]       # torch.flatten(x), features


if __name__ == "__main__":
    N, F, H, E = 16, 8, 32, 40        # nodes, num_features, nhid, edges

    key = jax.random.PRNGKey(0)
    kx, ke_src, ke_dst, kw, kp = jax.random.split(key, 5)

    x = jax.random.normal(kx, (N, F), jnp.float32)
    src = jax.random.randint(ke_src, (E,), 0, N, dtype=jnp.int32)
    dst = jax.random.randint(ke_dst, (E,), 0, N, dtype=jnp.int32)
    edge_index = jnp.stack([src, dst], axis=0)                 # (2, E)
    edge_weight = jax.random.uniform(kw, (E,), jnp.float32, 0.5, 1.5)

    params = init_params(F, H, kp)

    out_flat, features = gcn_forward(x, edge_index, edge_weight, params)
    jax.block_until_ready((out_flat, features))

    assert out_flat.shape == (N,)
    assert features.shape == (N, H)

    # pure-JAX f32 reference (bf16 adjacency / XW casts give small, bounded error)
    a1_ref = _gcn_norm_dense(edge_index, edge_weight, N)
    a2_ref = _cluster_gcn_norm_dense(edge_index, N)
    h_ref = jnp.maximum(a1_ref @ (x @ params["w1"]) + params["b1"], 0.0)
    out_ref = ((a2_ref @ h_ref) @ params["w_out"] + params["b_out"]
               + h_ref @ params["w_root"]).reshape(-1)
    assert float(jnp.max(jnp.abs(out_flat - out_ref))) < 1e-1
    assert float(jnp.max(jnp.abs(features - h_ref))) < 1e-1

    print("KERNEL_OK")
</pallas_src>

<mosaic_0001>
module attributes {stable_mosaic.version = 11 : i64} {
  func.func @_lin1_kernel(%arg0: i32, %arg1: memref<256x8xf32, #tpu.memory_space<vmem>>, %arg2: memref<8x32xf32, #tpu.memory_space<vmem>>, %arg3: memref<256x32xbf16, #tpu.memory_space<vmem>>) attributes {dimension_semantics = [#tpu.dimension_semantics<parallel>], iteration_bounds = array<i64: 1>, scalar_prefetch = 0 : i64, scratch_operands = 0 : i64, tpu.core_type = #tpu.core_type<tc>, window_params = [{transform_indices = @transform_0, window_bounds = array<i64: 256, 8>}, {pipeline_mode = #tpu.pipeline_mode<synchronous>, transform_indices = @transform_1, window_bounds = array<i64: 8, 32>}, {transform_indices = @transform_2, window_bounds = array<i64: 256, 32>}]} {
    %c0 = arith.constant 0 : index
    %c0_0 = arith.constant 0 : index
    %0 = vector.load %arg1[%c0, %c0_0] : memref<256x8xf32, #tpu.memory_space<vmem>>, vector<256x8xf32>
    %c0_1 = arith.constant 0 : index
    %c0_2 = arith.constant 0 : index
    %1 = vector.load %arg2[%c0_1, %c0_2] : memref<8x32xf32, #tpu.memory_space<vmem>>, vector<8x32xf32>
    %cst = arith.constant dense<0.000000e+00> : vector<256x32xf32>
    %2 = tpu.matmul %0, %1, %cst {dimension_numbers = #tpu.dot_dimension_numbers<[1], [0], [0], [1], [0, 0, 1, 1], [], []>} : vector<256x8xf32>, vector<8x32xf32>, vector<256x32xf32> -> vector<256x32xf32>
    %3 = arith.truncf %2 : vector<256x32xf32> to vector<256x32xbf16>
    %c0_3 = arith.constant 0 : index
    %c0_4 = arith.constant 0 : index
    %4 = vector.load %arg3[%c0_3, %c0_4] : memref<256x32xbf16, #tpu.memory_space<vmem>>, vector<256x32xbf16>
    tpu.vector_store %arg3[%c0_3, %c0_4], %3 {strides = array<i32>} : memref<256x32xbf16, #tpu.memory_space<vmem>>, vector<256x32xbf16>,
    return
  }
  func.func @transform_0(%arg0: i32) -> (i32, i32) {
    %c0_i32 = arith.constant 0 : i32
    %c0_i32_0 = arith.constant 0 : i32
    return %arg0, %c0_i32 : i32, i32
  }
  func.func @transform_1(%arg0: i32) -> (i32, i32) {
    %c0_i32 = arith.constant 0 : i32
    %c0_i32_0 = arith.constant 0 : i32
    %c0_i32_1 = arith.constant 0 : i32
    return %c0_i32, %c0_i32_0 : i32, i32
  }
  func.func @transform_2(%arg0: i32) -> (i32, i32) {
    %c0_i32 = arith.constant 0 : i32
    %c0_i32_0 = arith.constant 0 : i32
    return %arg0, %c0_i32 : i32, i32
  }
}

</mosaic_0001>

<bundles_post_ra>
// kernel: tpu_custom_call.1
= control target key start
LH: loop header
LB: loop body
LE: loop exit
PB: predicated region body
PF: predicated region fallthrough
CT: control target
= control target key end

     0   :  { %vm44_vm0 = vcmask 64512   ;;  %vm494_vm1 = vcmask 257024   ;;  %s986_s1 = inlined_call_operand.vmem [shape: f32[8,32], index: 1, kind: input, shape index: {}]   ;;  %s987_s0 = inlined_call_operand.vmem [shape: f32[256,8], index: 0, kind: input, shape index: {}]   ;;  %s988_s2 = inlined_call_operand.vmem [shape: bf16[256,32], index: 2, kind: output, shape index: {}]  }
   0x1   :  { %v43_v0 = vld [vmem:[%s986_s1] sm:$0xff]  ;;  %v12_v3 = vld [vmem:[%s987_s0 + $0x8] sm:$0xff]  ;;  %v13_v5 = vld [vmem:[%s987_s0 + $0x10] sm:$0xff] }
   0x2   :  { %v11_v1 = vld [vmem:[%s987_s0] sm:$0xff]  ;;  %660 = vmatprep.subr.mxu0 %v43_v0  ;;  %710 = vmatprep.subr.mxu1 %v43_v0  ;;  %v28_v4 = vld [vmem:[%s987_s0 + $0x88] sm:$0xff]  ;;  %v29_v6 = vld [vmem:[%s987_s0 + $0x90] sm:$0xff] }
   0x3   :  { %v27_v2 = vld [vmem:[%s987_s0 + $0x80] sm:$0xff]  ;;  %661 = vmatpush3.msra.mxu0 %v43_v0  ;;  %711 = vmatpush3.msra.mxu1 %v43_v0  ;;  %v14_v7 = vld [vmem:[%s987_s0 + $0x18] sm:$0xff]  ;;  %v16_v11 = vld [vmem:[%s987_s0 + $0x28] sm:$0xff] }
   0x4   :  { %662 = vmatprep.mubr.msk.f32.mxu0 %vm44_vm0, %v11_v1  ;;  %686 = vmatprep.mubr.msk.f32.mxu1 %vm44_vm0, %v27_v2  ;;  %v30_v8 = vld [vmem:[%s987_s0 + $0x98] sm:$0xff]  ;;  %v15_v9 = vld [vmem:[%s987_s0 + $0x20] sm:$0xff]  ;;  %v32_v12 = vld [vmem:[%s987_s0 + $0xa8] sm:$0xff] }
   0x5   :  { %663 = vmatmul.mubr.msk.f32.vlgmr.msra.gmra.mxu0 %vm44_vm0, %v12_v3  ;;  %687 = vmatmul.mubr.msk.f32.vlgmr.msra.gmra.mxu1 %vm44_vm0, %v28_v4  ;;  %v31_v10 = vld [vmem:[%s987_s0 + $0xa0] sm:$0xff]  ;;  %v17_v13 = vld [vmem:[%s987_s0 + $0x30] sm:$0xff]  ;;  %v18_v15 = vld [vmem:[%s987_s0 + $0x38] sm:$0xff] }
   0x6   :  { %665 = vmatprep.mubr.msk.f32.mxu0 %vm44_vm0, %v13_v5  ;;  %689 = vmatprep.mubr.msk.f32.mxu1 %vm44_vm0, %v29_v6  ;;  %v33_v14 = vld [vmem:[%s987_s0 + $0xb0] sm:$0xff]  ;;  %v34_v16 = vld [vmem:[%s987_s0 + $0xb8] sm:$0xff]  ;;  %v19_v17 = vld [vmem:[%s987_s0 + $0x40] sm:$0xff] }
   0x7   :  { %v35_v18 = vld [vmem:[%s987_s0 + $0xc0] sm:$0xff]  ;;  %v20_v19 = vld [vmem:[%s987_s0 + $0x48] sm:$0xff]  ;;  %v21_v21 = vld [vmem:[%s987_s0 + $0x50] sm:$0xff] }
   0x8   :  { %v36_v20 = vld [vmem:[%s987_s0 + $0xc8] sm:$0xff]  ;;  %v37_v22 = vld [vmem:[%s987_s0 + $0xd0] sm:$0xff]  ;;  %v22_v23 = vld [vmem:[%s987_s0 + $0x58] sm:$0xff] }
   0x9   :  { %666 = vmatmul.mubr.msk.f32.gmra.mxu0 %vm44_vm0, %v14_v7  ;;  %690 = vmatmul.mubr.msk.f32.gmra.mxu1 %vm44_vm0, %v30_v8  ;;  %v38_v24 = vld [vmem:[%s987_s0 + $0xd8] sm:$0xff]  ;;  %v23_v25 = vld [vmem:[%s987_s0 + $0x60] sm:$0xff]  ;;  %v24_v27 = vld [vmem:[%s987_s0 + $0x68] sm:$0xff] }
   0xa   :  { %668 = vmatprep.mubr.msk.f32.mxu0 %vm44_vm0, %v15_v9  ;;  %692 = vmatprep.mubr.msk.f32.mxu1 %vm44_vm0, %v31_v10  ;;  %v39_v26 = vld [vmem:[%s987_s0 + $0xe0] sm:$0xff]  ;;  %v40_v28 = vld [vmem:[%s987_s0 + $0xe8] sm:$0xff]  ;;  %v25_v29 = vld [vmem:[%s987_s0 + $0x70] sm:$0xff] }
   0xb   :  { %v41_v30 = vld [vmem:[%s987_s0 + $0xf0] sm:$0xff]  ;;  %v26_v31 = vld [vmem:[%s987_s0 + $0x78] sm:$0xff] }
   0xc   :  { %v42_v32 = vld [vmem:[%s987_s0 + $0xf8] sm:$0xff] }
   0xd   :  { %669 = vmatmul.mubr.msk.f32.gmra.mxu0 %vm44_vm0, %v16_v11  ;;  %693 = vmatmul.mubr.msk.f32.gmra.mxu1 %vm44_vm0, %v32_v12 }
   0xe   :  { %671 = vmatprep.mubr.msk.f32.mxu0 %vm44_vm0, %v17_v13  ;;  %695 = vmatprep.mubr.msk.f32.mxu1 %vm44_vm0, %v33_v14 }
  0x11   :  { %672 = vmatmul.mubr.msk.f32.gmra.mxu0 %vm44_vm0, %v18_v15  ;;  %696 = vmatmul.mubr.msk.f32.gmra.mxu1 %vm44_vm0, %v34_v16 }
  0x12   :  { %674 = vmatprep.mubr.msk.f32.mxu0 %vm44_vm0, %v19_v17  ;;  %698 = vmatprep.mubr.msk.f32.mxu1 %vm44_vm0, %v35_v18 }
  0x15   :  { %675 = vmatmul.mubr.msk.f32.gmra.mxu0 %vm44_vm0, %v20_v19  ;;  %699 = vmatmul.mubr.msk.f32.gmra.mxu1 %vm44_vm0, %v36_v20 }
  0x16   :  { %677 = vmatprep.mubr.msk.f32.mxu0 %vm44_vm0, %v21_v21  ;;  %701 = vmatprep.mubr.msk.f32.mxu1 %vm44_vm0, %v37_v22 }
  0x19   :  { %678 = vmatmul.mubr.msk.f32.gmra.mxu0 %vm44_vm0, %v22_v23  ;;  %702 = vmatmul.mubr.msk.f32.gmra.mxu1 %vm44_vm0, %v38_v24 }
  0x1a   :  { %680 = vmatprep.mubr.msk.f32.mxu0 %vm44_vm0, %v23_v25  ;;  %704 = vmatprep.mubr.msk.f32.mxu1 %vm44_vm0, %v39_v26 }
  0x1d   :  { %681 = vmatmul.mubr.msk.f32.gmra.mxu0 %vm44_vm0, %v24_v27  ;;  %705 = vmatmul.mubr.msk.f32.gmra.mxu1 %vm44_vm0, %v40_v28 }
  0x1e   :  { %683 = vmatprep.mubr.msk.f32.mxu0 %vm44_vm0, %v25_v29  ;;  %707 = vmatprep.mubr.msk.f32.mxu1 %vm44_vm0, %v41_v30 }
  0x21   :  { %684 = vmatmul.mubr.msk.f32.gmra.mxu0 %vm44_vm0, %v26_v31  ;;  %708 = vmatmul.mubr.msk.f32.gmra.mxu1 %vm44_vm0, %v42_v32 }
  0xc5   :  { %v664_v33 = vpop.f32.mrf.mxu0  ;;  %v688_v34 = vpop.f32.mrf.mxu1 }
  0xc6   :  { %v596_v35 = vpack.c.bf16 %v664_v33, %v664_v33  ;;  %v612_v36 = vpack.c.bf16 %v688_v34, %v688_v34 }
  0xc7   :  { %v207_v37 = vpop.f32.mrf.mxu0  ;;  %v287_v38 = vpop.f32.mrf.mxu1 }
  0xc8   :  { %496 = vst.msk [vmem:[%s988_s2 + $0x4] sm:$0xf] %vm494_vm1, %v596_v35  ;;  %512 = vst.msk [vmem:[%s988_s2 + $0x44] sm:$0xf] %vm494_vm1, %v612_v36  ;;  %v595_v39 = vpack.c.bf16 %v207_v37, %v207_v37  ;;  %v611_v40 = vpack.c.bf16 %v287_v38, %v287_v38 }
  0xc9   :  { %v667_v41 = vpop.f32.mrf.mxu0  ;;  %v691_v42 = vpop.f32.mrf.mxu1 }
  0xca   :  { %495 = vst.msk [vmem:[%s988_s2] sm:$0xf] %vm494_vm1, %v595_v39  ;;  %511 = vst.msk [vmem:[%s988_s2 + $0x40] sm:$0xf] %vm494_vm1, %v611_v40  ;;  %v598_v43 = vpack.c.bf16 %v667_v41, %v667_v41  ;;  %v614_v44 = vpack.c.bf16 %v691_v42, %v691_v42 }
  0xcb   :  { %v217_v45 = vpop.f32.mrf.mxu0  ;;  %v297_v46 = vpop.f32.mrf.mxu1 }
  0xcc   :  { %498 = vst.msk [vmem:[%s988_s2 + $0xc] sm:$0xf] %vm494_vm1, %v598_v43  ;;  %514 = vst.msk [vmem:[%s988_s2 + $0x4c] sm:$0xf] %vm494_vm1, %v614_v44  ;;  %v597_v47 = vpack.c.bf16 %v217_v45, %v217_v45  ;;  %v613_v48 = vpack.c.bf16 %v297_v46, %v297_v46 }
  0xcd   :  { %v670_v49 = vpop.f32.mrf.mxu0  ;;  %v694_v50 = vpop.f32.mrf.mxu1 }
  0xce   :  { %497 = vst.msk [vmem:[%s988_s2 + $0x8] sm:$0xf] %vm494_vm1, %v597_v47  ;;  %513 = vst.msk [vmem:[%s988_s2 + $0x48] sm:$0xf] %vm494_vm1, %v613_v48  ;;  %v600_v51 = vpack.c.bf16 %v670_v49, %v670_v49  ;;  %v616_v52 = vpack.c.bf16 %v694_v50, %v694_v50 }
  0xcf   :  { %v227_v53 = vpop.f32.mrf.mxu0  ;;  %v307_v54 = vpop.f32.mrf.mxu1 }
  0xd0   :  { %500 = vst.msk [vmem:[%s988_s2 + $0x14] sm:$0xf] %vm494_vm1, %v600_v51  ;;  %516 = vst.msk [vmem:[%s988_s2 + $0x54] sm:$0xf] %vm494_vm1, %v616_v52  ;;  %v599_v55 = vpack.c.bf16 %v227_v53, %v227_v53  ;;  %v615_v56 = vpack.c.bf16 %v307_v54, %v307_v54 }
  0xd1   :  { %v673_v57 = vpop.f32.mrf.mxu0  ;;  %v697_v58 = vpop.f32.mrf.mxu1 }
  0xd2   :  { %499 = vst.msk [vmem:[%s988_s2 + $0x10] sm:$0xf] %vm494_vm1, %v599_v55  ;;  %515 = vst.msk [vmem:[%s988_s2 + $0x50] sm:$0xf] %vm494_vm1, %v615_v56  ;;  %v602_v59 = vpack.c.bf16 %v673_v57, %v673_v57  ;;  %v618_v60 = vpack.c.bf16 %v697_v58, %v697_v58 }
  0xd3   :  { %v237_v61 = vpop.f32.mrf.mxu0  ;;  %v317_v62 = vpop.f32.mrf.mxu1 }
  0xd4   :  { %502 = vst.msk [vmem:[%s988_s2 + $0x1c] sm:$0xf] %vm494_vm1, %v602_v59  ;;  %518 = vst.msk [vmem:[%s988_s2 + $0x5c] sm:$0xf] %vm494_vm1, %v618_v60  ;;  %v601_v63 = vpack.c.bf16 %v237_v61, %v237_v61  ;;  %v617_v0 = vpack.c.bf16 %v317_v62, %v317_v62 }
  0xd5   :  { %v676_v1 = vpop.f32.mrf.mxu0  ;;  %v700_v2 = vpop.f32.mrf.mxu1 }
  0xd6   :  { %501 = vst.msk [vmem:[%s988_s2 + $0x18] sm:$0xf] %vm494_vm1, %v601_v63  ;;  %517 = vst.msk [vmem:[%s988_s2 + $0x58] sm:$0xf] %vm494_vm1, %v617_v0  ;;  %v604_v3 = vpack.c.bf16 %v676_v1, %v676_v1  ;;  %v620_v4 = vpack.c.bf16 %v700_v2, %v700_v2 }
  0xd7   :  { %v247_v5 = vpop.f32.mrf.mxu0  ;;  %v327_v6 = vpop.f32.mrf.mxu1 }
  0xd8   :  { %504 = vst.msk [vmem:[%s988_s2 + $0x24] sm:$0xf] %vm494_vm1, %v604_v3  ;;  %520 = vst.msk [vmem:[%s988_s2 + $0x64] sm:$0xf] %vm494_vm1, %v620_v4  ;;  %v603_v7 = vpack.c.bf16 %v247_v5, %v247_v5  ;;  %v619_v8 = vpack.c.bf16 %v327_v6, %v327_v6 }
  0xd9   :  { %v679_v9 = vpop.f32.mrf.mxu0  ;;  %v703_v10 = vpop.f32.mrf.mxu1 }
  0xda   :  { %503 = vst.msk [vmem:[%s988_s2 + $0x20] sm:$0xf] %vm494_vm1, %v603_v7  ;;  %519 = vst.msk [vmem:[%s988_s2 + $0x60] sm:$0xf] %vm494_vm1, %v619_v8  ;;  %v606_v11 = vpack.c.bf16 %v679_v9, %v679_v9  ;;  %v622_v12 = vpack.c.bf16 %v703_v10, %v703_v10 }
  0xdb   :  { %v257_v13 = vpop.f32.mrf.mxu0  ;;  %v337_v14 = vpop.f32.mrf.mxu1 }
  0xdc   :  { %506 = vst.msk [vmem:[%s988_s2 + $0x2c] sm:$0xf] %vm494_vm1, %v606_v11  ;;  %522 = vst.msk [vmem:[%s988_s2 + $0x6c] sm:$0xf] %vm494_vm1, %v622_v12  ;;  %v605_v15 = vpack.c.bf16 %v257_v13, %v257_v13  ;;  %v621_v16 = vpack.c.bf16 %v337_v14, %v337_v14 }
  0xdd   :  { %v682_v17 = vpop.f32.mrf.mxu0  ;;  %v706_v18 = vpop.f32.mrf.mxu1 }
  0xde   :  { %505 = vst.msk [vmem:[%s988_s2 + $0x28] sm:$0xf] %vm494_vm1, %v605_v15  ;;  %521 = vst.msk [vmem:[%s988_s2 + $0x68] sm:$0xf] %vm494_vm1, %v621_v16  ;;  %v608_v19 = vpack.c.bf16 %v682_v17, %v682_v17  ;;  %v624_v20 = vpack.c.bf16 %v706_v18, %v706_v18 }
  0xdf   :  { %v267_v21 = vpop.f32.mrf.mxu0  ;;  %v347_v22 = vpop.f32.mrf.mxu1 }
  0xe0   :  { %508 = vst.msk [vmem:[%s988_s2 + $0x34] sm:$0xf] %vm494_vm1, %v608_v19  ;;  %524 = vst.msk [vmem:[%s988_s2 + $0x74] sm:$0xf] %vm494_vm1, %v624_v20  ;;  %v607_v23 = vpack.c.bf16 %v267_v21, %v267_v21  ;;  %v623_v24 = vpack.c.bf16 %v347_v22, %v347_v22 }
  0xe1   :  { %v685_v25 = vpop.f32.mrf.mxu0  ;;  %v709_v26 = vpop.f32.mrf.mxu1 }
  0xe2   :  { %507 = vst.msk [vmem:[%s988_s2 + $0x30] sm:$0xf] %vm494_vm1, %v607_v23  ;;  %523 = vst.msk [vmem:[%s988_s2 + $0x70] sm:$0xf] %vm494_vm1, %v623_v24  ;;  %v610_v27 = vpack.c.bf16 %v685_v25, %v685_v25  ;;  %v626_v28 = vpack.c.bf16 %v709_v26, %v709_v26 }
  0xe3   :  { %v277_v29 = vpop.f32.mrf.mxu0  ;;  %v357_v30 = vpop.f32.mrf.mxu1 }
  0xe4   :  { %510 = vst.msk [vmem:[%s988_s2 + $0x3c] sm:$0xf] %vm494_vm1, %v610_v27  ;;  %526 = vst.msk [vmem:[%s988_s2 + $0x7c] sm:$0xf] %vm494_vm1, %v626_v28  ;;  %v609_v31 = vpack.c.bf16 %v277_v29, %v277_v29  ;;  %v625_v32 = vpack.c.bf16 %v357_v30, %v357_v30 }
  0xe6   :  { %509 = vst.msk [vmem:[%s988_s2 + $0x38] sm:$0xf] %vm494_vm1, %v609_v31  ;;  %525 = vst.msk [vmem:[%s988_s2 + $0x78] sm:$0xf] %vm494_vm1, %v625_v32 }

</bundles_post_ra>
